<compile_context>
chip_gen: v5e
topology: v5e:2x2
jax: 0.10.0
libtpu: 0.0.40
codegen_flags: <defaults>
</compile_context>

<pallas_src>
import functools

import jax
import jax.numpy as jnp
from jax import lax
from jax.experimental import pallas as pl
from jax.experimental.pallas import tpu as pltpu

HIDDEN = 128


# --------------------------------------------------------------------------------------
# Kernel 1: time-batched input projection  gates_x = X @ Wih_cat + b_cat
# --------------------------------------------------------------------------------------
def _input_proj_kernel(x_ref, w_ref, b_ref, g_ref):
    # x: [rows, E] bf16, w: [E, 8H] bf16, b: [1, 8H] f32, g: [rows, 8H] f32
    g_ref[...] = (
        jnp.dot(x_ref[...], w_ref[...], preferred_element_type=jnp.float32)
        + b_ref[...]
    )


# --------------------------------------------------------------------------------------
# Kernel 2: fused bidirectional recurrence + avg/max pooling + linear head
# --------------------------------------------------------------------------------------
def _bilstm_rec_kernel(seq_len, t_chunk, n_chunks,
                       gx_f_ref, gx_b_ref, whh_ref, wout_ref, bout_ref,
                       out_ref, h_ref, cf_ref, cb_ref, s_ref, m_ref):
    H = HIDDEN
    H2, H4 = 2 * H, 4 * H
    tc = pl.program_id(1)

    @pl.when(tc == 0)
    def _init():
        h_ref[...] = jnp.zeros_like(h_ref)
        cf_ref[...] = jnp.zeros_like(cf_ref)
        cb_ref[...] = jnp.zeros_like(cb_ref)
        s_ref[...] = jnp.zeros_like(s_ref)
        m_ref[...] = jnp.full_like(m_ref, -jnp.inf)

    whh = whh_ref[...]  # [2H, 8H] bf16 block-diagonal: rows 0:H -> cols 0:4H, rows H:2H -> cols 4H:8H

    def cell(g, c):
        # PyTorch gate order i, f, g, o; all math in f32.
        i_g = jax.nn.sigmoid(g[:, 0 * H:1 * H])
        f_g = jax.nn.sigmoid(g[:, 1 * H:2 * H])
        g_g = jnp.tanh(g[:, 2 * H:3 * H])
        o_g = jax.nn.sigmoid(g[:, 3 * H:4 * H])
        c_new = f_g * c + i_g * g_g
        h_new = o_g * jnp.tanh(c_new)
        return h_new, c_new

    def step(tt, carry):
        h, c_f, c_b = carry  # h: [B, 2H] f32 = [h_f | h_b]
        # Single block-diagonal recurrent matmul produces both directions' gates (K=256).
        g_rec = jnp.dot(h.astype(jnp.bfloat16), whh,
                        preferred_element_type=jnp.float32)          # [B, 8H]
        g_f = g_rec[:, :H4] + gx_f_ref[tt]                           # fwd gates at time t
        g_b = g_rec[:, H4:] + gx_b_ref[t_chunk - 1 - tt]             # bwd gates at time T-1-t
        h_f, c_f = cell(g_f, c_f)
        h_b, c_b = cell(g_b, c_b)
        h_new = jnp.concatenate([h_f, h_b], axis=-1)                 # [B, 2H]
        # Pooling accumulators stay in VMEM scratch (out of the loop carry).
        s_ref[...] = s_ref[...] + h_new
        m_ref[...] = jnp.maximum(m_ref[...], h_new)
        return h_new, c_f, c_b

    carry0 = (h_ref[...], cf_ref[...], cb_ref[...])
    h, c_f, c_b = lax.fori_loop(0, t_chunk, step, carry0, unroll=2)
    h_ref[...] = h
    cf_ref[...] = c_f
    cb_ref[...] = c_b

    @pl.when(tc == n_chunks - 1)
    def _head():
        # feat = [avg_f, avg_b, max_f, max_b]; head done as VPU multiply + lane reduction.
        w = wout_ref[...]                               # [1, 4H]
        inv_t = 1.0 / float(seq_len)
        feat = (s_ref[...] * inv_t) * w[:, :H2] + m_ref[...] * w[:, H2:]
        out_ref[...] = jnp.sum(feat, axis=-1, keepdims=True) + bout_ref[...]


# --------------------------------------------------------------------------------------
# Wrapper
# --------------------------------------------------------------------------------------
def _pick_divisor(n, candidates):
    for c in candidates:
        if c <= n and n % c == 0:
            return c
    return n  # fall back to full extent


def lstm_forward(tokens, params):
    """tokens: [B, T] int32 token ids -> [B, 1] float32."""
    H = HIDDEN
    H2, H4, H8 = 2 * H, 4 * H, 8 * H
    B, T = tokens.shape
    E = params["embedding"].shape[1]

    # Glue: embedding gather produced directly time-major (no separate transpose pass).
    x_tbe = jnp.take(params["embedding"], tokens.T, axis=0)            # [T, B, E] f32
    x_flat = x_tbe.reshape(T * B, E).astype(jnp.bfloat16)              # bf16 matmul operand

    # Fused weight layouts (built once from the PyTorch-layout params).
    wih_cat = jnp.concatenate([params["wih_f"], params["wih_b"]],
                              axis=1).astype(jnp.bfloat16)             # [E, 8H]
    b_cat = jnp.concatenate([params["b_f"], params["b_b"]], axis=1)    # [1, 8H] f32
    zpad = jnp.zeros((H, H4), jnp.float32)
    whh_cat = jnp.concatenate(
        [jnp.concatenate([params["whh_f"], zpad], axis=1),
         jnp.concatenate([zpad, params["whh_b"]], axis=1)],
        axis=0).astype(jnp.bfloat16)                                   # [2H, 8H] block-diag
    wout = params["wout"]                                              # [1, 4H]
    bout = params["bout"]                                              # [1, 1]

    # ---- kernel 1: hoisted input projection over all T*B rows ----
    rows = T * B
    row_tile = _pick_divisor(rows, (512, 256, 128, 64, 32, 16, 8))
    gates_flat = pl.pallas_call(
        _input_proj_kernel,
        out_shape=jax.ShapeDtypeStruct((rows, H8), jnp.float32),
        grid_spec=pltpu.PrefetchScalarGridSpec(
            num_scalar_prefetch=0,
            grid=(rows // row_tile,),
            in_specs=[
                pl.BlockSpec((row_tile, E), lambda r: (r, 0)),
                pl.BlockSpec((E, H8), lambda r: (0, 0)),
                pl.BlockSpec((1, H8), lambda r: (0, 0)),
            ],
            out_specs=pl.BlockSpec((row_tile, H8), lambda r: (r, 0)),
        ),
        compiler_params=pltpu.CompilerParams(dimension_semantics=("parallel",)),
    )(x_flat, wih_cat, b_cat)
    gates = gates_flat.reshape(T, B, H8)    # [:, :, :4H] fwd gates, [:, :, 4H:] bwd gates

    # ---- kernel 2: fused bidirectional recurrence, streamed over time chunks ----
    b_tile = B if (B <= 128 or B % 128 != 0) else 128
    t_chunk = _pick_divisor(T, (32, 16, 8, 4, 2, 1))
    n_chunks = T // t_chunk
    n_btiles = B // b_tile

    kernel = functools.partial(_bilstm_rec_kernel, T, t_chunk, n_chunks)
    out = pl.pallas_call(
        kernel,
        out_shape=jax.ShapeDtypeStruct((B, 1), jnp.float32),
        grid_spec=pltpu.PrefetchScalarGridSpec(
            num_scalar_prefetch=0,
            grid=(n_btiles, n_chunks),
            in_specs=[
                # fwd gate stream: ascending time chunks, fwd half of the last dim
                pl.BlockSpec((t_chunk, b_tile, H4), lambda b, t: (t, b, 0)),
                # bwd gate stream: descending time chunks, bwd half of the last dim
                pl.BlockSpec((t_chunk, b_tile, H4),
                             lambda b, t: (n_chunks - 1 - t, b, 1)),
                pl.BlockSpec((H2, H8), lambda b, t: (0, 0)),   # block-diagonal Whh
                pl.BlockSpec((1, H4), lambda b, t: (0, 0)),    # head weight row
                pl.BlockSpec((1, 1), lambda b, t: (0, 0)),     # head bias
            ],
            out_specs=pl.BlockSpec((b_tile, 1), lambda b, t: (b, 0)),
            scratch_shapes=[
                pltpu.VMEM((b_tile, H2), jnp.float32),  # h = [h_f | h_b]
                pltpu.VMEM((b_tile, H), jnp.float32),   # c_f
                pltpu.VMEM((b_tile, H), jnp.float32),   # c_b
                pltpu.VMEM((b_tile, H2), jnp.float32),  # running sum (avg pool)
                pltpu.VMEM((b_tile, H2), jnp.float32),  # running max (max pool)
            ],
        ),
        compiler_params=pltpu.CompilerParams(
            dimension_semantics=("parallel", "arbitrary")),
    )(gates, gates, whh_cat, wout, bout)
    return out


# --------------------------------------------------------------------------------------
# Params / reference / test
# --------------------------------------------------------------------------------------
def make_params(key, num_words, embed_dim):
    H = HIDDEN
    ks = jax.random.split(key, 9)
    scale = 0.1
    return {
        "embedding": jax.random.normal(ks[0], (num_words, embed_dim), jnp.float32),
        # forward direction (PyTorch gate order i, f, g, o), stored transposed [E, 4H]
        "wih_f": scale * jax.random.normal(ks[1], (embed_dim, 4 * H), jnp.float32),
        "whh_f": scale * jax.random.normal(ks[2], (H, 4 * H), jnp.float32),
        "b_f": scale * jax.random.normal(ks[3], (1, 4 * H), jnp.float32),
        # backward direction
        "wih_b": scale * jax.random.normal(ks[4], (embed_dim, 4 * H), jnp.float32),
        "whh_b": scale * jax.random.normal(ks[5], (H, 4 * H), jnp.float32),
        "b_b": scale * jax.random.normal(ks[6], (1, 4 * H), jnp.float32),
        # output linear: PyTorch weight layout [1, 512]
        "wout": scale * jax.random.normal(ks[7], (1, 4 * H), jnp.float32),
        "bout": scale * jax.random.normal(ks[8], (1, 1), jnp.float32),
    }


def _reference(tokens, params):
    """Pure-JAX f32 reference matching the PyTorch forward semantics."""
    H = HIDDEN
    emb = jnp.take(params["embedding"], tokens, axis=0)  # [B, T, E]
    B, T, _ = emb.shape

    def run(x_seq, wih, whh, b, reverse):
        ts = range(T - 1, -1, -1) if reverse else range(T)
        h = jnp.zeros((B, H), jnp.float32)
        c = jnp.zeros((B, H), jnp.float32)
        hs = [None] * T
        for t in ts:
            g = x_seq[:, t, :] @ wih + h @ whh + b
            i_g = jax.nn.sigmoid(g[:, 0 * H:1 * H])
            f_g = jax.nn.sigmoid(g[:, 1 * H:2 * H])
            g_g = jnp.tanh(g[:, 2 * H:3 * H])
            o_g = jax.nn.sigmoid(g[:, 3 * H:4 * H])
            c = f_g * c + i_g * g_g
            h = o_g * jnp.tanh(c)
            hs[t] = h
        return jnp.stack(hs, axis=1)  # [B, T, H]

    hf = run(emb, params["wih_f"], params["whh_f"], params["b_f"], False)
    hb = run(emb, params["wih_b"], params["whh_b"], params["b_b"], True)
    x = jnp.concatenate([hf, hb], axis=-1)                 # [B, T, 2H]
    avg_pool = jnp.mean(x, axis=1)                         # [B, 2H]
    max_pool = jnp.max(x, axis=1)                          # [B, 2H]
    feat = jnp.concatenate([avg_pool, max_pool], axis=1)   # [B, 4H]
    return feat @ params["wout"].T + params["bout"]


if __name__ == "__main__":
    key = jax.random.PRNGKey(0)
    k_tok, k_par = jax.random.split(key)

    num_words, embed_dim = 100, 64
    batch, seq_len = 2, 8

    tokens = jax.random.randint(k_tok, (batch, seq_len), 0, num_words, dtype=jnp.int32)
    params = make_params(k_par, num_words, embed_dim)

    out = jax.block_until_ready(lstm_forward(tokens, params))
    ref = _reference(tokens, params)

    assert out.shape == (batch, 1)
    # bf16 matmul operands (with f32 accumulation, f32 state/gate math) introduce
    # ~1e-3-level differences vs. the pure-f32 reference; 2e-2 leaves a wide margin.
    assert jnp.allclose(out, ref, rtol=2e-2, atol=2e-2), (out, ref)

    print("KERNEL_OK")
</pallas_src>

<mosaic_0001>
module attributes {stable_mosaic.version = 11 : i64} {
  func.func @_input_proj_kernel(%arg0: i32, %arg1: memref<16x64xbf16, #tpu.memory_space<vmem>>, %arg2: memref<64x1024xbf16, #tpu.memory_space<vmem>>, %arg3: memref<1x1024xf32, #tpu.memory_space<vmem>>, %arg4: memref<16x1024xf32, #tpu.memory_space<vmem>>) attributes {dimension_semantics = [#tpu.dimension_semantics<parallel>], iteration_bounds = array<i64: 1>, scalar_prefetch = 0 : i64, scratch_operands = 0 : i64, tpu.core_type = #tpu.core_type<tc>, window_params = [{transform_indices = @transform_0, window_bounds = array<i64: 16, 64>}, {pipeline_mode = #tpu.pipeline_mode<synchronous>, transform_indices = @transform_1, window_bounds = array<i64: 64, 1024>}, {pipeline_mode = #tpu.pipeline_mode<synchronous>, transform_indices = @transform_2, window_bounds = array<i64: 1, 1024>}, {transform_indices = @transform_3, window_bounds = array<i64: 16, 1024>}]} {
    %c0 = arith.constant 0 : index
    %c0_0 = arith.constant 0 : index
    %0 = vector.load %arg1[%c0, %c0_0] : memref<16x64xbf16, #tpu.memory_space<vmem>>, vector<16x64xbf16>
    %c0_1 = arith.constant 0 : index
    %c0_2 = arith.constant 0 : index
    %1 = vector.load %arg2[%c0_1, %c0_2] : memref<64x1024xbf16, #tpu.memory_space<vmem>>, vector<64x1024xbf16>
    %cst = arith.constant dense<0.000000e+00> : vector<16x1024xf32>
    %2 = tpu.matmul %0, %1, %cst {dimension_numbers = #tpu.dot_dimension_numbers<[1], [0], [0], [1], [0, 0, 1, 1], [], []>} : vector<16x64xbf16>, vector<64x1024xbf16>, vector<16x1024xf32> -> vector<16x1024xf32>
    %c0_3 = arith.constant 0 : index
    %c0_4 = arith.constant 0 : index
    %3 = vector.load %arg3[%c0_3, %c0_4] : memref<1x1024xf32, #tpu.memory_space<vmem>>, vector<1x1024xf32>
    %4 = vector.broadcast %3 : vector<1x1024xf32> to vector<16x1024xf32>
    %5 = arith.addf %2, %4 : vector<16x1024xf32>
    %c0_5 = arith.constant 0 : index
    %c0_6 = arith.constant 0 : index
    %6 = vector.load %arg4[%c0_5, %c0_6] : memref<16x1024xf32, #tpu.memory_space<vmem>>, vector<16x1024xf32>
    tpu.vector_store %arg4[%c0_5, %c0_6], %5 {strides = array<i32>} : memref<16x1024xf32, #tpu.memory_space<vmem>>, vector<16x1024xf32>,
    return
  }
  func.func @transform_0(%arg0: i32) -> (i32, i32) {
    %c0_i32 = arith.constant 0 : i32
    %c0_i32_0 = arith.constant 0 : i32
    return %arg0, %c0_i32 : i32, i32
  }
  func.func @transform_1(%arg0: i32) -> (i32, i32) {
    %c0_i32 = arith.constant 0 : i32
    %c0_i32_0 = arith.constant 0 : i32
    %c0_i32_1 = arith.constant 0 : i32
    return %c0_i32, %c0_i32_0 : i32, i32
  }
  func.func @transform_2(%arg0: i32) -> (i32, i32) {
    %c0_i32 = arith.constant 0 : i32
    %c0_i32_0 = arith.constant 0 : i32
    %c0_i32_1 = arith.constant 0 : i32
    return %c0_i32, %c0_i32_0 : i32, i32
  }
  func.func @transform_3(%arg0: i32) -> (i32, i32) {
    %c0_i32 = arith.constant 0 : i32
    %c0_i32_0 = arith.constant 0 : i32
    return %arg0, %c0_i32 : i32, i32
  }
}

</mosaic_0001>

<bundles_post_ra>
// kernel: tpu_custom_call.1
= control target key start
LH: loop header
LB: loop body
LE: loop exit
PB: predicated region body
PF: predicated region fallthrough
CT: control target
= control target key end

     0   :  { %8 = vsyncpa [#allocation3], 0  ;;  %s776_s0 = inlined_call_operand.hbm [shape: bf16[16,64], index: 0, kind: input, shape index: {}]   ;;  %s777_s1 = inlined_call_operand.hbm [shape: bf16[64,1024], index: 1, kind: input, shape index: {}]   ;;  %s778_s2 = inlined_call_operand.hbm [shape: f32[1,1024], index: 2, kind: input, shape index: {}]   ;;  %s779_s3 = inlined_call_operand.hbm [shape: f32[16,1024], index: 3, kind: output, shape index: {}]  }
   0x1   :  { %9 = vsyncpa [#allocation6], 0  ;;  %s28_s14 = sshll.u32 %s777_s1, 4  ;;  %s29_s14 = int_to_ptr.hbm [resolvable:$true] %s28_s14 }
   0x2   :  { %10 = vsyncpa [#allocation4], 0  ;;  %s714_s15 = smov [#allocation5]   ;;  %s15_s19 = sshll.u32 %s776_s0, 4  ;;  %s16_s19 = int_to_ptr.hbm [resolvable:$true] %s15_s19 }
   0x3   :  { %s30_s16 = sshll.u32 %s714_s15, 4  ;;  %s715_s20 = smov 512   ;;  %s31_s16 = int_to_ptr.vmem [resolvable:$true] %s30_s16 }
   0x4   :  { %s716_s21 = smov 32   ;;  %s717_s22 = smov [#allocation2]  }
   0x5   :  { %36 = dma.hbm_to_vmem [thread:$0]  %s29_s14, 4096, %s31_s16, [#allocation6], %s715_s20, %s715_s20, %s716_s21  }
   0x6   :  { %s17_s23 = sshll.u32 %s717_s22, 4  ;;  %s718_s24 = smov 64   ;;  %s18_s23 = int_to_ptr.vmem [resolvable:$true] %s17_s23 }
   0x7   :  { %s719_s25 = smov 4   ;;  %s42_s27 = sshll.u32 %s778_s2, 4  ;;  %s43_s27 = int_to_ptr.hbm [resolvable:$true] %s42_s27 }
   0x8   :  { %23 = dma.hbm_to_vmem [thread:$0]  %s16_s19, 128, %s18_s23, [#allocation3], %s718_s24, %s718_s24, %s719_s25  }
   0x9   :  { %s720_s28 = smov [#allocation7]  }
   0xa   :  { %s44_s29 = sshll.u32 %s720_s28, 4  ;;  %s45_s29 = int_to_ptr.vmem [resolvable:$true] %s44_s29 }
   0xb   :  { %47 = dma.hbm_to_vmem [thread:$0]  %s43_s27, 128, %s45_s29, [#allocation6]  }
   0xc   :  { %708 = dma.done.wait [#allocation3], 128  }
   0xd   :  { %709 = vsyncadd [#allocation3], 4294967168 }
   0xe   :  { %710 = dma.done.wait [#allocation6], 4224  }
   0xf   :  { %711 = vsyncadd [#allocation6], 4294963072  ;;  %v532_v0 = vld [vmem:[#allocation5 + $0xc0] sm:$0xf]  ;;  %v595_v2 = vld [vmem:[#allocation5 + $0xc4] sm:$0xf] }
  0x10   :  { %v599_v1 = vld [vmem:[#allocation5 + $0xdc] sm:$0xf0]  ;;  %v534_v4 = vld [vmem:[#allocation5 + $0xe0] sm:$0xf0]  ;;  %v540_v5 = vld [vmem:[#allocation5 + $0xc8] sm:$0xf] }
  0x11   :  { %v533_v3 = vor.u32 %v599_v1, %v532_v0  ;;  %v600_v6 = vld [vmem:[#allocation5 + $0xe4] sm:$0xf0]  ;;  %v537_v7 = vor.u32 %v595_v2, %v534_v4  ;;  %v596_v9 = vld [vmem:[#allocation5 + $0xcc] sm:$0xf]  ;;  %v500_v11 = vld [vmem:[#allocation5 + $0x80] sm:$0xf] }
  0x12   :  { %v541_v8 = vor.u32 %v600_v6, %v540_v5  ;;  %v542_v10 = vld [vmem:[#allocation5 + $0xe8] sm:$0xf0]  ;;  %v591_v13 = vld [vmem:[#allocation5 + $0x9c] sm:$0xf0]  ;;  %v587_v14 = vld [vmem:[#allocation5 + $0x84] sm:$0xf] }
  0x13   :  { %286 = vmatpush.bf16.msra.mxu0 %v533_v3  ;;  %v545_v12 = vor.u32 %v596_v9, %v542_v10  ;;  %v502_v15 = vld [vmem:[#allocation5 + $0xa0] sm:$0xf0]  ;;  %300 = vmatpush.bf16.msra.mxu1 %v537_v7  ;;  %v501_v16 = vor.u32 %v591_v13, %v500_v11  ;;  %v508_v18 = vld [vmem:[#allocation5 + $0x88] sm:$0xf]  ;;  %v588_v20 = vld [vmem:[#allocation5 + $0x8c] sm:$0xf] }
  0x14   :  { %314 = vmatpush.bf16.msra.mxu2 %v541_v8  ;;  %v505_v17 = vor.u32 %v587_v14, %v502_v15  ;;  %v592_v19 = vld [vmem:[#allocation5 + $0xa4] sm:$0xf0]  ;;  %v510_v22 = vld [vmem:[#allocation5 + $0xa8] sm:$0xf0]  ;;  %v468_v23 = vld [vmem:[#allocation5 + $0x40] sm:$0xf] }
  0x15   :  { %328 = vmatpush.bf16.msra.mxu3 %v545_v12  ;;  %v509_v21 = vor.u32 %v592_v19, %v508_v18  ;;  %v583_v24 = vld [vmem:[#allocation5 + $0x5c] sm:$0xf0]  ;;  %v513_v25 = vor.u32 %v588_v20, %v510_v22  ;;  %v579_v26 = vld [vmem:[#allocation5 + $0x44] sm:$0xf]  ;;  %v476_v28 = vld [vmem:[#allocation5 + $0x48] sm:$0xf] }
  0x16   :  { %v470_v27 = vld [vmem:[#allocation5 + $0x60] sm:$0xf0]  ;;  %v469_v29 = vor.u32 %v583_v24, %v468_v23  ;;  %v584_v30 = vld [vmem:[#allocation5 + $0x64] sm:$0xf0]  ;;  %v580_v31 = vld [vmem:[#allocation5 + $0x4c] sm:$0xf] }
  0x17   :  { %287 = vmatpush.bf16.msra.mxu0 %v501_v16  ;;  %v478_v32 = vld [vmem:[#allocation5 + $0x68] sm:$0xf0]  ;;  %301 = vmatpush.bf16.msra.mxu1 %v505_v17  ;;  %v473_v33 = vor.u32 %v579_v26, %v470_v27  ;;  %v477_v34 = vor.u32 %v584_v30, %v476_v28  ;;  %v436_v35 = vld [vmem:[#allocation5] sm:$0xf]  ;;  %v571_v37 = vld [vmem:[#allocation5 + $0x4] sm:$0xf] }
  0x18   :  { %315 = vmatpush.bf16.msra.mxu2 %v509_v21  ;;  %v575_v36 = vld [vmem:[#allocation5 + $0x1c] sm:$0xf0]  ;;  %v481_v38 = vor.u32 %v580_v31, %v478_v32  ;;  %v438_v39 = vld [vmem:[#allocation5 + $0x20] sm:$0xf0]  ;;  %v444_v40 = vld [vmem:[#allocation5 + $0x8] sm:$0xf] }
  0x19   :  { %329 = vmatpush.bf16.msra.mxu3 %v513_v25  ;;  %v576_v41 = vld [vmem:[#allocation5 + $0x24] sm:$0xf0]  ;;  %v572_v42 = vld [vmem:[#allocation5 + $0xc] sm:$0xf]  ;;  %v437_v44 = vor.u32 %v575_v36, %v436_v35  ;;  %v556_v45 = vld [vmem:[#allocation5 + $0xd8] sm:$0xf]  ;;  %v441_v48 = vor.u32 %v571_v37, %v438_v39 }
  0x1a   :  { %v446_v43 = vld [vmem:[#allocation5 + $0x28] sm:$0xf0]  ;;  %v602_v46 = vld [vmem:[#allocation5 + $0xf4] sm:$0xf0]  ;;  %v598_v47 = vld [vmem:[#allocation5 + $0xdc] sm:$0xf]  ;;  %v445_v49 = vor.u32 %v576_v41, %v444_v40 }
  0x1b   :  { %288 = vmatpush.bf16.msra.mxu0 %v469_v29  ;;  %302 = vmatpush.bf16.msra.mxu1 %v473_v33  ;;  %v754_v50 = vld [vmem:[#allocation2] sm:$0xff]  ;;  %v449_v52 = vor.u32 %v572_v42, %v446_v43  ;;  %v557_v53 = vor.u32 %v602_v46, %v556_v45  ;;  %v548_v54 = vld [vmem:[#allocation5 + $0xd0] sm:$0xf]  ;;  %v597_v56 = vld [vmem:[#allocation5 + $0xd4] sm:$0xf]  ;;  %vm278_vm0 = vcmask 523264  }
  0x1c   :  { %316 = vmatpush.bf16.msra.mxu2 %v477_v34  ;;  %v558_v51 = vld [vmem:[#allocation5 + $0xf8] sm:$0xf0]  ;;  %v601_v55 = vld [vmem:[#allocation5 + $0xec] sm:$0xf0]  ;;  %v550_v58 = vld [vmem:[#allocation5 + $0xf0] sm:$0xf0] }
  0x1d   :  { %330 = vmatpush.bf16.msra.mxu3 %v481_v38  ;;  %v561_v57 = vor.u32 %v598_v47, %v558_v51  ;;  %v524_v59 = vld [vmem:[#allocation5 + $0x98] sm:$0xf]  ;;  %v590_v61 = vld [vmem:[#allocation5 + $0x9c] sm:$0xf]  ;;  %v549_v63 = vor.u32 %v601_v55, %v548_v54  ;;  %v553_v0 = vor.u32 %v597_v56, %v550_v58  ;;  %v516_v2 = vld [vmem:[#allocation5 + $0x90] sm:$0xf] }
  0x1e   :  { %v594_v60 = vld [vmem:[#allocation5 + $0xb4] sm:$0xf0]  ;;  %v526_v62 = vld [vmem:[#allocation5 + $0xb8] sm:$0xf0]  ;;  %v593_v3 = vld [vmem:[#allocation5 + $0xac] sm:$0xf0] }
  0x1f   :  { %289 = vmatpush.bf16.msra.mxu0 %v437_v44  ;;  %303 = vmatpush.bf16.msra.mxu1 %v441_v48  ;;  %v525_v1 = vor.u32 %v594_v60, %v524_v59  ;;  %v589_v4 = vld [vmem:[#allocation5 + $0x94] sm:$0xf]  ;;  %v529_v5 = vor.u32 %v590_v61, %v526_v62  ;;  %v492_v7 = vld [vmem:[#allocation5 + $0x58] sm:$0xf]  ;;  %v582_v9 = vld [vmem:[#allocation5 + $0x5c] sm:$0xf]  ;;  %v517_v11 = vor.u32 %v593_v3, %v516_v2 }
  0x20   :  { %317 = vmatpush.bf16.msra.mxu2 %v445_v49  ;;  %v518_v6 = vld [vmem:[#allocation5 + $0xb0] sm:$0xf0]  ;;  %v586_v8 = vld [vmem:[#allocation5 + $0x74] sm:$0xf0]  ;;  %v494_v10 = vld [vmem:[#allocation5 + $0x78] sm:$0xf0] }
  0x21   :  { %331 = vmatpush.bf16.msra.mxu3 %v449_v52  ;;  %v521_v12 = vor.u32 %v589_v4, %v518_v6  ;;  %v493_v13 = vor.u32 %v586_v8, %v492_v7  ;;  %v484_v14 = vld [vmem:[#allocation5 + $0x50] sm:$0xf]  ;;  %v581_v16 = vld [vmem:[#allocation5 + $0x54] sm:$0xf]  ;;  %v497_v17 = vor.u32 %v582_v9, %v494_v10  ;;  %v460_v19 = vld [vmem:[#allocation5 + $0x18] sm:$0xf] }
  0x22   :  { %562 = vmatmul.msk.bf16.vlgmr.msra.gmra.mxu0 %vm278_vm0, %v754_v50  ;;  %563 = vmatmul.msk.bf16.vlgmr.msra.gmra.mxu1 %vm278_vm0, %v754_v50  ;;  %v585_v15 = vld [vmem:[#allocation5 + $0x6c] sm:$0xf0]  ;;  %v486_v18 = vld [vmem:[#allocation5 + $0x70] sm:$0xf0]  ;;  %v578_v20 = vld [vmem:[#allocation5 + $0x34] sm:$0xf0] }
  0x23   :  { %564 = vmatmul.msk.bf16.vlgmr.msra.gmra.mxu2 %vm278_vm0, %v754_v50  ;;  %342 = vmatpush.bf16.msrb.mxu0 %v549_v63  ;;  %v574_v21 = vld [vmem:[#allocation5 + $0x1c] sm:$0xf]  ;;  %v485_v23 = vor.u32 %v585_v15, %v484_v14  ;;  %v489_v24 = vor.u32 %v581_v16, %v486_v18  ;;  %v461_v25 = vor.u32 %v578_v20, %v460_v19  ;;  %v452_v26 = vld [vmem:[#allocation5 + $0x10] sm:$0xf]  ;;  %v573_v29 = vld [vmem:[#allocation5 + $0x14] sm:$0xf] }
  0x24   :  { %370 = vmatpush.bf16.msrb.mxu2 %v557_v53  ;;  %565 = vmatmul.msk.bf16.vlgmr.msra.gmra.mxu3 %vm278_vm0, %v754_v50  ;;  %v462_v22 = vld [vmem:[#allocation5 + $0x38] sm:$0xf0]  ;;  %v577_v27 = vld [vmem:[#allocation5 + $0x2c] sm:$0xf0]  ;;  %v454_v30 = vld [vmem:[#allocation5 + $0x30] sm:$0xf0] }
  0x25   :  { %384 = vmatpush.bf16.msrb.mxu3 %v561_v57  ;;  %356 = vmatpush.bf16.msrb.mxu1 %v553_v0  ;;  %v465_v28 = vor.u32 %v574_v21, %v462_v22  ;;  %v453_v31 = vor.u32 %v577_v27, %v452_v26  ;;  %v457_v32 = vor.u32 %v573_v29, %v454_v30  ;;  %v95_v33 = vld [vmem:[#allocation7] sm:$0xff]  ;;  %s721_s0 = smov [#allocation8]   ;;  %s416_s5 = sshll.u32 %s779_s3, 4  ;;  %s417_s5 = int_to_ptr.hbm [resolvable:$true] %s416_s5 }
  0x26   :  { %v97_v34 = vperm.slane %v95_v33, 0  ;;  %v98_v35 = vperm.slane %v95_v33, 1  ;;  %v99_v40 = vperm.slane %v95_v33, 2  ;;  %v100_v41 = vperm.slane %v95_v33, 3  ;;  %s414_s2 = sshll.u32 %s721_s0, 4  ;;  %s722_s6 = smov 1024   ;;  %s415_s2 = int_to_ptr.vmem [resolvable:$true] %s414_s2 }
  0x27   :  { %343 = vmatpush.bf16.msrb.mxu0 %v517_v11  ;;  %v102_v52 = vperm.slane %v95_v33, 5  ;;  %v103_v60 = vperm.slane %v95_v33, 6  ;;  %v104_v61 = vperm.slane %v95_v33, 7 }
  0x28   :  { %371 = vmatpush.bf16.msrb.mxu2 %v525_v1 }
  0x29   :  { %385 = vmatpush.bf16.msrb.mxu3 %v529_v5  ;;  %357 = vmatpush.bf16.msrb.mxu1 %v521_v12 }
  0x2b   :  { %344 = vmatpush.bf16.msrb.mxu0 %v485_v23 }
  0x2c   :  { %372 = vmatpush.bf16.msrb.mxu2 %v493_v13 }
  0x2d   :  { %386 = vmatpush.bf16.msrb.mxu3 %v497_v17  ;;  %358 = vmatpush.bf16.msrb.mxu1 %v489_v24 }
  0x2f   :  { %345 = vmatpush.bf16.msrb.mxu0 %v453_v31 }
  0x30   :  { %373 = vmatpush.bf16.msrb.mxu2 %v461_v25 }
  0x31   :  { %387 = vmatpush.bf16.msrb.mxu3 %v465_v28  ;;  %359 = vmatpush.bf16.msrb.mxu1 %v457_v32 }
  0x32   :  { %566 = vmatmul.msk.bf16.vlgmr.msrb.gmra.mxu0 %vm278_vm0, %v754_v50 }
  0x33   :  { %568 = vmatmul.msk.bf16.vlgmr.msrb.gmra.mxu2 %vm278_vm0, %v754_v50 }
  0x34   :  { %567 = vmatmul.msk.bf16.vlgmr.msrb.gmra.mxu1 %vm278_vm0, %v754_v50  ;;  %569 = vmatmul.msk.bf16.vlgmr.msrb.gmra.mxu3 %vm278_vm0, %v754_v50  ;;  %v101_v50 = vperm.slane %v95_v33, 4 }
  0x9f   :  { %v291_v36 = vpop.f32.mrf.mxu0  ;;  %v305_v38 = vpop.f32.mrf.mxu1 }
  0xa0   :  { %v292_v37 = vadd.f32 %v291_v36, %v97_v34  ;;  %v306_v39 = vadd.f32 %v305_v38, %v98_v35 }
  0xa2   :  { %394 = vst [vmem:[#allocation8] sm:$0xff] %v292_v37 }
  0xa3   :  { %395 = vst [vmem:[#allocation8 + $0x8] sm:$0xff] %v306_v39 }
  0xa6   :  { %v319_v42 = vpop.f32.mrf.mxu2 }
  0xa7   :  { %v320_v43 = vadd.f32 %v319_v42, %v99_v40  ;;  %v333_v44 = vpop.f32.mrf.mxu3  ;;  %v293_v45 = vpop.f32.mrf.mxu0 }
  0xa8   :  { %v334_v46 = vadd.f32 %v333_v44, %v100_v41  ;;  %v294_v47 = vadd.f32 %v293_v45, %v97_v34  ;;  %v307_v48 = vpop.f32.mrf.mxu1 }
  0xa9   :  { %396 = vst [vmem:[#allocation8 + $0x10] sm:$0xff] %v320_v43  ;;  %v308_v49 = vadd.f32 %v307_v48, %v98_v35 }
  0xaa   :  { %397 = vst [vmem:[#allocation8 + $0x18] sm:$0xff] %v334_v46 }
  0xab   :  { %402 = vst [vmem:[#allocation8 + $0x40] sm:$0xff] %v294_v47 }
  0xac   :  { %403 = vst [vmem:[#allocation8 + $0x48] sm:$0xff] %v308_v49 }
  0xae   :  { %v321_v51 = vpop.f32.mrf.mxu2 }
  0xaf   :  { %v322_v53 = vadd.f32 %v321_v51, %v99_v40  ;;  %v335_v54 = vpop.f32.mrf.mxu3  ;;  %v347_v56 = vpop.f32.mrf.mxu0 }
  0xb0   :  { %v336_v55 = vadd.f32 %v335_v54, %v100_v41  ;;  %v348_v57 = vadd.f32 %v347_v56, %v101_v50 }
  0xb1   :  { %404 = vst [vmem:[#allocation8 + $0x50] sm:$0xff] %v322_v53  ;;  %v361_v58 = vpop.f32.mrf.mxu1 }
  0xb2   :  { %405 = vst [vmem:[#allocation8 + $0x58] sm:$0xff] %v336_v55  ;;  %v362_v59 = vadd.f32 %v361_v58, %v102_v52 }
  0xb3   :  { %398 = vst [vmem:[#allocation8 + $0x20] sm:$0xff] %v348_v57 }
  0xb4   :  { %399 = vst [vmem:[#allocation8 + $0x28] sm:$0xff] %v362_v59 }
  0xb6   :  { %v375_v62 = vpop.f32.mrf.mxu2 }
  0xb7   :  { %v376_v63 = vadd.f32 %v375_v62, %v103_v60  ;;  %v389_v0 = vpop.f32.mrf.mxu3  ;;  %v349_v2 = vpop.f32.mrf.mxu0 }
  0xb8   :  { %v390_v1 = vadd.f32 %v389_v0, %v104_v61  ;;  %v350_v3 = vadd.f32 %v349_v2, %v101_v50 }
  0xb9   :  { %400 = vst [vmem:[#allocation8 + $0x30] sm:$0xff] %v376_v63  ;;  %v363_v4 = vpop.f32.mrf.mxu1 }
  0xba   :  { %401 = vst [vmem:[#allocation8 + $0x38] sm:$0xff] %v390_v1  ;;  %v364_v5 = vadd.f32 %v363_v4, %v102_v52 }
  0xbb   :  { %406 = vst [vmem:[#allocation8 + $0x60] sm:$0xff] %v350_v3 }
  0xbc   :  { %407 = vst [vmem:[#allocation8 + $0x68] sm:$0xff] %v364_v5 }
  0xbe   :  { %v377_v6 = vpop.f32.mrf.mxu2 }
  0xbf   :  { %v378_v7 = vadd.f32 %v377_v6, %v103_v60  ;;  %v391_v8 = vpop.f32.mrf.mxu3 }
  0xc0   :  { %v392_v9 = vadd.f32 %v391_v8, %v104_v61 }
  0xc1   :  { %408 = vst [vmem:[#allocation8 + $0x70] sm:$0xff] %v378_v7 }
  0xc2   :  { %409 = vst [vmem:[#allocation8 + $0x78] sm:$0xff] %v392_v9 }
  0xc3   :  { %422 = dma.vmem_to_hbm [thread:$0]  %s415_s2, 2048, %s417_s5, [#allocation4], %s722_s6, %s722_s6, %s718_s24  }
  0xc4   :  { %712 = dma.done.wait [#allocation4], 2048  }
  0xc5   :  { %713 = vsyncadd [#allocation4], 4294965248 }
  0xc6   :  { %427 = vsyncpa [#allocation3], 1 }
  0xc7   :  { %428 = vsyncpa [#allocation6], 1 }
  0xc8   :  { %429 = vsyncpa [#allocation4], 1 }

</bundles_post_ra>
